<compile_context>
chip_gen: v5e
topology: v5e:2x2
jax: 0.10.0
libtpu: 0.0.40
codegen_flags: <defaults>
</compile_context>

<pallas_src>
import functools

import numpy as np
import jax
import jax.numpy as jnp
from jax.experimental import pallas as pl
from jax.experimental.pallas import tpu as pltpu


def create_dct_matrix(size: int) -> np.ndarray:
    """Exact port of DCTBlock.create()."""
    H = np.arange(0, size).reshape(-1, 1)
    W = (np.arange(0, size).reshape(1, -1) + 0.5) * np.pi / size
    A = np.cos(H * W)
    cu = np.ones((size, size)) * 2 / np.sqrt(size)
    cu[0, :] /= 2
    return (cu * A).astype(np.float32)


@functools.lru_cache(maxsize=8)
def _kron_dct_T_bf16(size: int) -> jnp.ndarray:
    """kron(A, A).T in bf16, precomputed once per image size (init-time const).

    M = kron(A, A) satisfies vec_row(A X A.T) = M @ vec_row(X).
    """
    A = create_dct_matrix(size).astype(np.float64)
    Mt = np.kron(A, A).T
    return jnp.asarray(Mt, dtype=jnp.bfloat16)   # (S*S, S*S), 128 KiB for S=16


def _round_up(x: int, m: int) -> int:
    return ((x + m - 1) // m) * m


def dct_block_kernel(mt_ref, x_ref, w_ref, b_ref, o_ref):
    # mt_ref : (S2, S2)   VMEM  bf16  -- kron(A, A).T, resident across the grid
    # x_ref  : (TB, C*S2) VMEM  f32   -- flattened NCHW batch tile (row-major)
    # w_ref  : (C,)       SMEM  f32   -- 1x1 conv weights (out_ch = 1)
    # b_ref  : (1,)       SMEM  f32   -- conv bias
    # o_ref  : (TB, S2)   VMEM  f32   -- lane-dense flattened output tile
    S2 = mt_ref.shape[0]
    C = x_ref.shape[1] // S2

    # Fold the 1x1 conv into the input (DCT is linear in x). Static, aligned
    # 256-wide lane slices; keep the fold math in f32 (v5e has no bf16 VALU),
    # then cast ONCE to bf16 to feed the MXU single-pass.
    xw = w_ref[0] * x_ref[:, 0:S2]
    for c in range(1, C):  # static small loop (C = 3)
        xw = xw + w_ref[c] * x_ref[:, c * S2:(c + 1) * S2]
    xw = xw.astype(jnp.bfloat16)

    # Two-sided DCT for the whole batch tile as one full-width bf16 MXU matmul,
    # accumulated in f32.
    out = jnp.dot(xw, mt_ref[...], preferred_element_type=jnp.float32)
    o_ref[...] = out + b_ref[0]


def dct_block_forward(x, conv_w, conv_b, block_b=None):
    """x: (B, C, S, S) float32 -> (B, S*S) float32."""
    B, C, H, W = x.shape
    assert H == W, "DCTBlock expects square images"
    S = H
    S2 = S * S

    # Precomputed constant (analogous to building A in __init__), bf16 resident.
    Mt = _kron_dct_T_bf16(S)

    # Pure contiguous view: NCHW row-major flatten -> (B, C*S*S). No HBM copy.
    x_flat = x.reshape(B, C * S2)

    if block_b is None:
        # Cap at 2048 rows/tile (fits the 32 MiB scoped VMEM default even on
        # v7x), but never use fewer than 2 grid steps for large B so the batch
        # axis can be sharded across both v7x TensorCores.
        block_b = min(B, 2048, _round_up(pl.cdiv(B, 2), 8))
    grid = (pl.cdiv(B, block_b),)

    # Note: if B % block_b != 0 the last tile's padded input rows produce
    # garbage output rows, but each output row depends only on its own input
    # row and the padded rows are masked on the output write -> safe.
    out = pl.pallas_call(
        dct_block_kernel,
        out_shape=jax.ShapeDtypeStruct((B, S2), jnp.float32),
        grid=grid,
        in_specs=[
            pl.BlockSpec((S2, S2), lambda i: (0, 0)),            # Mt (resident)
            pl.BlockSpec((block_b, C * S2), lambda i: (i, 0)),   # x batch tile
            pl.BlockSpec(memory_space=pltpu.SMEM),               # conv weights
            pl.BlockSpec(memory_space=pltpu.SMEM),               # conv bias
        ],
        out_specs=pl.BlockSpec((block_b, S2), lambda i: (i, 0)),  # lane-dense
        compiler_params=pltpu.CompilerParams(
            dimension_semantics=("parallel",)),
    )(Mt, x_flat, conv_w, conv_b)
    return out  # already (B, S*S) -- no extra reshape / masked narrow stores


if __name__ == "__main__":
    img_size = 16
    B, C = 2, 3  # conv is Conv2d(3, 1, 1, 1) -> input channels must be 3

    key = jax.random.PRNGKey(0)
    kx, kw, kb = jax.random.split(key, 3)

    x = jax.random.normal(kx, (B, C, img_size, img_size), dtype=jnp.float32)

    # DCT matrix (deterministic, same construction as the PyTorch module).
    A = jnp.asarray(create_dct_matrix(img_size))

    # Deterministic Conv2d(3, 1, 1, 1) params (kaiming-uniform-like bounds).
    bound = 1.0 / np.sqrt(C)
    conv_w = jax.random.uniform(kw, (C,), jnp.float32, -bound, bound)  # (1,3,1,1) flat
    conv_b = jax.random.uniform(kb, (1,), jnp.float32, -bound, bound)

    out = dct_block_forward(x, conv_w, conv_b)
    out = jax.block_until_ready(out)

    # Pure-JAX f32 reference (original two-sided matmul + 1x1 conv + flatten).
    ref = jnp.einsum('ij,bcjk,lk->bcil', A, x, A)               # A @ x @ A.T
    ref = jnp.einsum('bchw,c->bhw', ref, conv_w) + conv_b[0]    # 1x1 conv
    ref = ref.reshape(B, -1)
    assert out.shape == (B, img_size * img_size)
    # Tolerance loosened for bf16 MXU operands (f32 accumulation).
    np.testing.assert_allclose(np.asarray(out), np.asarray(ref),
                               rtol=2e-2, atol=2e-2)

    print("KERNEL_OK")
</pallas_src>

<mosaic_0001>
module attributes {stable_mosaic.version = 11 : i64} {
  func.func @dct_block_kernel(%arg0: i32, %arg1: memref<256x256xbf16, #tpu.memory_space<vmem>>, %arg2: memref<2x768xf32, #tpu.memory_space<vmem>>, %arg3: memref<3xf32, #tpu.memory_space<smem>>, %arg4: memref<1xf32, #tpu.memory_space<smem>>, %arg5: memref<2x256xf32, #tpu.memory_space<vmem>>) attributes {dimension_semantics = [#tpu.dimension_semantics<parallel>], iteration_bounds = array<i64: 1>, scalar_prefetch = 0 : i64, scratch_operands = 0 : i64, tpu.core_type = #tpu.core_type<tc>, window_params = [{pipeline_mode = #tpu.pipeline_mode<synchronous>, transform_indices = @transform_0, window_bounds = array<i64: 256, 256>}, {transform_indices = @transform_1, window_bounds = array<i64: 2, 768>}, {transform_indices = @transform_2, window_bounds = array<i64: 3>}, {transform_indices = @transform_3, window_bounds = array<i64: 1>}, {transform_indices = @transform_4, window_bounds = array<i64: 2, 256>}]} {
    %c0 = arith.constant 0 : index
    %0 = memref.load %arg3[%c0] : memref<3xf32, #tpu.memory_space<smem>>
    %c0_0 = arith.constant 0 : index
    %c0_1 = arith.constant 0 : index
    %1 = vector.load %arg2[%c0_0, %c0_1] : memref<2x768xf32, #tpu.memory_space<vmem>>, vector<2x256xf32>
    %2 = vector.broadcast %0 : f32 to vector<2x256xf32>
    %3 = arith.mulf %2, %1 : vector<2x256xf32>
    %c1 = arith.constant 1 : index
    %4 = memref.load %arg3[%c1] : memref<3xf32, #tpu.memory_space<smem>>
    %c0_2 = arith.constant 0 : index
    %c256 = arith.constant 256 : index
    %5 = vector.load %arg2[%c0_2, %c256] : memref<2x768xf32, #tpu.memory_space<vmem>>, vector<2x256xf32>
    %6 = vector.broadcast %4 : f32 to vector<2x256xf32>
    %7 = arith.mulf %6, %5 : vector<2x256xf32>
    %8 = arith.addf %3, %7 : vector<2x256xf32>
    %c2 = arith.constant 2 : index
    %9 = memref.load %arg3[%c2] : memref<3xf32, #tpu.memory_space<smem>>
    %c0_3 = arith.constant 0 : index
    %c512 = arith.constant 512 : index
    %10 = vector.load %arg2[%c0_3, %c512] : memref<2x768xf32, #tpu.memory_space<vmem>>, vector<2x256xf32>
    %11 = vector.broadcast %9 : f32 to vector<2x256xf32>
    %12 = arith.mulf %11, %10 : vector<2x256xf32>
    %13 = arith.addf %8, %12 : vector<2x256xf32>
    %14 = arith.truncf %13 : vector<2x256xf32> to vector<2x256xbf16>
    %c0_4 = arith.constant 0 : index
    %c0_5 = arith.constant 0 : index
    %15 = vector.load %arg1[%c0_4, %c0_5] : memref<256x256xbf16, #tpu.memory_space<vmem>>, vector<256x256xbf16>
    %cst = arith.constant dense<0.000000e+00> : vector<2x256xf32>
    %16 = tpu.matmul %14, %15, %cst {dimension_numbers = #tpu.dot_dimension_numbers<[1], [0], [0], [1], [0, 0, 1, 1], [], []>} : vector<2x256xbf16>, vector<256x256xbf16>, vector<2x256xf32> -> vector<2x256xf32>
    %c0_6 = arith.constant 0 : index
    %17 = memref.load %arg4[%c0_6] : memref<1xf32, #tpu.memory_space<smem>>
    %18 = vector.broadcast %17 : f32 to vector<2x256xf32>
    %19 = arith.addf %16, %18 : vector<2x256xf32>
    %c0_7 = arith.constant 0 : index
    %c0_8 = arith.constant 0 : index
    %20 = vector.load %arg5[%c0_7, %c0_8] : memref<2x256xf32, #tpu.memory_space<vmem>>, vector<2x256xf32>
    tpu.vector_store %arg5[%c0_7, %c0_8], %19 {strides = array<i32>} : memref<2x256xf32, #tpu.memory_space<vmem>>, vector<2x256xf32>,
    return
  }
  func.func @transform_0(%arg0: i32) -> (i32, i32) {
    %c0_i32 = arith.constant 0 : i32
    %c0_i32_0 = arith.constant 0 : i32
    %c0_i32_1 = arith.constant 0 : i32
    return %c0_i32, %c0_i32_0 : i32, i32
  }
  func.func @transform_1(%arg0: i32) -> (i32, i32) {
    %c0_i32 = arith.constant 0 : i32
    %c0_i32_0 = arith.constant 0 : i32
    return %arg0, %c0_i32 : i32, i32
  }
  func.func @transform_2(%arg0: i32) -> i32 {
    %c0_i32 = arith.constant 0 : i32
    %c0_i32_0 = arith.constant 0 : i32
    return %c0_i32 : i32
  }
  func.func @transform_3(%arg0: i32) -> i32 {
    %c0_i32 = arith.constant 0 : i32
    %c0_i32_0 = arith.constant 0 : i32
    return %c0_i32 : i32
  }
  func.func @transform_4(%arg0: i32) -> (i32, i32) {
    %c0_i32 = arith.constant 0 : i32
    %c0_i32_0 = arith.constant 0 : i32
    return %arg0, %c0_i32 : i32, i32
  }
}

</mosaic_0001>

<bundles_post_ra>
// kernel: tpu_custom_call.1
= control target key start
LH: loop header
LB: loop body
LE: loop exit
PB: predicated region body
PF: predicated region fallthrough
CT: control target
= control target key end

     0   :  { %10 = vsyncpa [#allocation4], 0  ;;  %s668_s0 = inlined_call_operand.hbm [shape: bf16[256,256], index: 0, kind: input, shape index: {}]   ;;  %s669_s1 = inlined_call_operand.hbm [shape: f32[2,768], index: 1, kind: input, shape index: {}]   ;;  %s670_s2 = inlined_call_operand.vmem [shape: f32[3], index: 2, kind: input, shape index: {}]   ;;  %s671_s3 = inlined_call_operand.<no memory space> [shape: f32[1], index: 3, kind: input, shape index: {}]   ;;  %s672_s4 = inlined_call_operand.hbm [shape: f32[2,256], index: 4, kind: output, shape index: {}]  }
   0x1   :  { %11 = vsyncpa [#allocation8], 0 }
   0x2   :  { %12 = vsyncpa [#allocation6], 0 }
   0x3   :  { %13 = vsyncpa [#allocation5], 0  ;;  %s18_s17 = sshll.u32 %s668_s0, 4  ;;  %s616_s18 = smov [#allocation3]   ;;  %s19_s17 = int_to_ptr.hbm [resolvable:$true] %s18_s17 }
   0x4   :  { %s20_s19 = sshll.u32 %s616_s18, 4  ;;  %s32_s22 = sshll.u32 %s669_s1, 4  ;;  %s21_s19 = int_to_ptr.vmem [resolvable:$true] %s20_s19  ;;  %s33_s22 = int_to_ptr.hbm [resolvable:$true] %s32_s22 }
   0x5   :  { %s617_s23 = smov 128   ;;  %s618_s24 = smov 8  }
   0x6   :  { %26 = dma.hbm_to_vmem [thread:$0]  %s19_s17, 4096, %s21_s19, [#allocation4], %s617_s23, %s617_s23, %s618_s24  }
   0x7   :  { %s619_s25 = smov [#allocation7]   ;;  %s43_s29 = sshll.u32 %s670_s2, 4  ;;  %s44_s29 = int_to_ptr.vmem [resolvable:$true] %s43_s29 }
   0x8   :  { %s34_s26 = sshll.u32 %s619_s25, 4  ;;  %s620_s0 = smov [#allocation9]   ;;  %s35_s26 = int_to_ptr.vmem [resolvable:$true] %s34_s26 }
   0x9   :  { %37 = dma.hbm_to_vmem [thread:$0]  %s33_s22, 192, %s35_s26, [#allocation8]  }
   0xa   :  { %46 = dma.vmem_to_smem %s44_s29, 16, %s620_s0, [#allocation6]  }
   0xb   :  { %608 = dma.done.wait [#allocation4], 4096  }
   0xc   :  { %609 = vsyncadd [#allocation4], 4294963200 }
   0xd   :  { %610 = dma.done.wait [#allocation8], 192  }
   0xe   :  { %611 = vsyncadd [#allocation8], 4294967104 }
   0xf   :  { %612 = dma.done.wait [#allocation6], 16  }
  0x10   :  { %613 = vsyncadd [#allocation6], 4294967280 }
  0x11   :  { %61 = sfence }
  0x12   :  { %v416_v0 = vld [vmem:[#allocation3 + $0x70] sm:$0xf]  ;;  %v501_v1 = vld [vmem:[#allocation3 + $0x74] sm:$0xf0]  ;;  %v500_v5 = vld [vmem:[#allocation3 + $0x74] sm:$0xf] }
  0x13   :  { %v480_v2 = vld [vmem:[#allocation3 + $0xf0] sm:$0xf]  ;;  %v417_v3 = vor.u32 %v501_v1, %v416_v0  ;;  %v517_v4 = vld [vmem:[#allocation3 + $0xf4] sm:$0xf0]  ;;  %v418_v6 = vld [vmem:[#allocation3 + $0x78] sm:$0xf0] }
  0x14   :  { %v481_v7 = vor.u32 %v517_v4, %v480_v2  ;;  %v421_v8 = vor.u32 %v500_v5, %v418_v6  ;;  %v516_v9 = vld [vmem:[#allocation3 + $0xf4] sm:$0xf]  ;;  %v482_v10 = vld [vmem:[#allocation3 + $0xf8] sm:$0xf0]  ;;  %v408_v11 = vld [vmem:[#allocation3 + $0x60] sm:$0xf] }
  0x15   :  { %278 = vmatpush.bf16.msra.mxu0 %v417_v3  ;;  %v485_v12 = vor.u32 %v516_v9, %v482_v10  ;;  %v499_v13 = vld [vmem:[#allocation3 + $0x64] sm:$0xf0]  ;;  %v472_v14 = vld [vmem:[#allocation3 + $0xe0] sm:$0xf]  ;;  %v498_v18 = vld [vmem:[#allocation3 + $0x64] sm:$0xf] }
  0x16   :  { %v515_v15 = vld [vmem:[#allocation3 + $0xe4] sm:$0xf0]  ;;  %291 = vmatpush.bf16.msra.mxu1 %v481_v7  ;;  %304 = vmatpush.bf16.msra.mxu2 %v421_v8  ;;  %v409_v16 = vor.u32 %v499_v13, %v408_v11  ;;  %v410_v19 = vld [vmem:[#allocation3 + $0x68] sm:$0xf0]  ;;  %v514_v20 = vld [vmem:[#allocation3 + $0xe4] sm:$0xf] }
  0x17   :  { %v473_v17 = vor.u32 %v515_v15, %v472_v14  ;;  %317 = vmatpush.bf16.msra.mxu3 %v485_v12  ;;  %v413_v21 = vor.u32 %v498_v18, %v410_v19  ;;  %v474_v22 = vld [vmem:[#allocation3 + $0xe8] sm:$0xf0]  ;;  %v400_v23 = vld [vmem:[#allocation3 + $0x50] sm:$0xf]  ;;  %v497_v24 = vld [vmem:[#allocation3 + $0x54] sm:$0xf0] }
  0x18   :  { %v477_v25 = vor.u32 %v514_v20, %v474_v22  ;;  %v464_v26 = vld [vmem:[#allocation3 + $0xd0] sm:$0xf]  ;;  %v513_v27 = vld [vmem:[#allocation3 + $0xd4] sm:$0xf0]  ;;  %v496_v28 = vld [vmem:[#allocation3 + $0x54] sm:$0xf]  ;;  %v401_v29 = vor.u32 %v497_v24, %v400_v23 }
  0x19   :  { %279 = vmatpush.bf16.msra.mxu0 %v409_v16  ;;  %v402_v30 = vld [vmem:[#allocation3 + $0x58] sm:$0xf0]  ;;  %v512_v31 = vld [vmem:[#allocation3 + $0xd4] sm:$0xf]  ;;  %v465_v33 = vor.u32 %v513_v27, %v464_v26  ;;  %v392_v35 = vld [vmem:[#allocation3 + $0x40] sm:$0xf] }
  0x1a   :  { %v466_v32 = vld [vmem:[#allocation3 + $0xd8] sm:$0xf0]  ;;  %292 = vmatpush.bf16.msra.mxu1 %v473_v17  ;;  %305 = vmatpush.bf16.msra.mxu2 %v413_v21  ;;  %v405_v34 = vor.u32 %v496_v28, %v402_v30  ;;  %v495_v36 = vld [vmem:[#allocation3 + $0x44] sm:$0xf0]  ;;  %v456_v37 = vld [vmem:[#allocation3 + $0xc0] sm:$0xf] }
  0x1b   :  { %318 = vmatpush.bf16.msra.mxu3 %v477_v25  ;;  %v469_v38 = vor.u32 %v512_v31, %v466_v32  ;;  %v511_v39 = vld [vmem:[#allocation3 + $0xc4] sm:$0xf0]  ;;  %v494_v40 = vld [vmem:[#allocation3 + $0x44] sm:$0xf]  ;;  %v394_v41 = vld [vmem:[#allocation3 + $0x48] sm:$0xf0]  ;;  %v393_v44 = vor.u32 %v495_v36, %v392_v35 }
  0x1c   :  { %v510_v42 = vld [vmem:[#allocation3 + $0xc4] sm:$0xf]  ;;  %v458_v43 = vld [vmem:[#allocation3 + $0xc8] sm:$0xf0]  ;;  %v457_v45 = vor.u32 %v511_v39, %v456_v37  ;;  %v397_v46 = vor.u32 %v494_v40, %v394_v41  ;;  %v384_v47 = vld [vmem:[#allocation3 + $0x30] sm:$0xf] }
  0x1d   :  { %280 = vmatpush.bf16.msra.mxu0 %v401_v29  ;;  %v493_v48 = vld [vmem:[#allocation3 + $0x34] sm:$0xf0]  ;;  %v448_v49 = vld [vmem:[#allocation3 + $0xb0] sm:$0xf]  ;;  %v461_v50 = vor.u32 %v510_v42, %v458_v43  ;;  %v492_v52 = vld [vmem:[#allocation3 + $0x34] sm:$0xf] }
  0x1e   :  { %293 = vmatpush.bf16.msra.mxu1 %v465_v33  ;;  %306 = vmatpush.bf16.msra.mxu2 %v405_v34  ;;  %v509_v51 = vld [vmem:[#allocation3 + $0xb4] sm:$0xf0]  ;;  %v386_v53 = vld [vmem:[#allocation3 + $0x38] sm:$0xf0]  ;;  %v508_v54 = vld [vmem:[#allocation3 + $0xb4] sm:$0xf]  ;;  %v385_v56 = vor.u32 %v493_v48, %v384_v47 }
  0x1f   :  { %319 = vmatpush.bf16.msra.mxu3 %v469_v38  ;;  %v450_v55 = vld [vmem:[#allocation3 + $0xb8] sm:$0xf0]  ;;  %v449_v57 = vor.u32 %v509_v51, %v448_v49  ;;  %v389_v58 = vor.u32 %v492_v52, %v386_v53  ;;  %v376_v59 = vld [vmem:[#allocation3 + $0x20] sm:$0xf]  ;;  %v491_v60 = vld [vmem:[#allocation3 + $0x24] sm:$0xf0]  ;;  %v117_v49 = vstv %s671_s3 }
  0x20   :  { %v440_v61 = vld [vmem:[#allocation3 + $0xa0] sm:$0xf]  ;;  %v453_v62 = vor.u32 %v508_v54, %v450_v55  ;;  %v507_v63 = vld [vmem:[#allocation3 + $0xa4] sm:$0xf0]  ;;  %v490_v0 = vld [vmem:[#allocation3 + $0x24] sm:$0xf]  ;;  %v377_v4 = vor.u32 %v491_v60, %v376_v59 }
  0x21   :  { %281 = vmatpush.bf16.msra.mxu0 %v393_v44  ;;  %v378_v1 = vld [vmem:[#allocation3 + $0x28] sm:$0xf0]  ;;  %v506_v2 = vld [vmem:[#allocation3 + $0xa4] sm:$0xf]  ;;  %v368_v5 = vld [vmem:[#allocation3 + $0x10] sm:$0xf]  ;;  %v441_v6 = vor.u32 %v507_v63, %v440_v61 }
  0x22   :  { %294 = vmatpush.bf16.msra.mxu1 %v457_v45  ;;  %307 = vmatpush.bf16.msra.mxu2 %v397_v46  ;;  %v442_v3 = vld [vmem:[#allocation3 + $0xa8] sm:$0xf0]  ;;  %v381_v7 = vor.u32 %v490_v0, %v378_v1  ;;  %v489_v8 = vld [vmem:[#allocation3 + $0x14] sm:$0xf0]  ;;  %v432_v9 = vld [vmem:[#allocation3 + $0x90] sm:$0xf] }
  0x23   :  { %320 = vmatpush.bf16.msra.mxu3 %v461_v50  ;;  %v505_v10 = vld [vmem:[#allocation3 + $0x94] sm:$0xf0]  ;;  %v445_v11 = vor.u32 %v506_v2, %v442_v3  ;;  %v488_v12 = vld [vmem:[#allocation3 + $0x14] sm:$0xf]  ;;  %v370_v13 = vld [vmem:[#allocation3 + $0x18] sm:$0xf0]  ;;  %v369_v16 = vor.u32 %v489_v8, %v368_v5 }
  0x24   :  { %s656_s1 = sld [smem:[#allocation9]]  ;;  %v504_v14 = vld [vmem:[#allocation3 + $0x94] sm:$0xf]  ;;  %v434_v15 = vld [vmem:[#allocation3 + $0x98] sm:$0xf0]  ;;  %v433_v18 = vor.u32 %v505_v10, %v432_v9  ;;  %v373_v19 = vor.u32 %v488_v12, %v370_v13  ;;  %s621_s7 = smov [#allocation10]  }
  0x25   :  { %282 = vmatpush.bf16.msra.mxu0 %v385_v56  ;;  %s658_s2 = sld [smem:[#allocation9 + $0x1]]  ;;  %v360_v17 = vld [vmem:[#allocation3] sm:$0xf]  ;;  %v487_v20 = vld [vmem:[#allocation3 + $0x4] sm:$0xf0]  ;;  %v437_v23 = vor.u32 %v504_v14, %v434_v15  ;;  %s342_s8 = sshll.u32 %s621_s7, 4  ;;  %s343_s8 = int_to_ptr.vmem [resolvable:$true] %s342_s8 }
  0x26   :  { %295 = vmatpush.bf16.msra.mxu1 %v449_v57  ;;  %308 = vmatpush.bf16.msra.mxu2 %v389_v58  ;;  %s357_s30 = sld [smem:[#allocation9 + $0x2]]  ;;  %v424_v21 = vld [vmem:[#allocation3 + $0x80] sm:$0xf]  ;;  %v503_v22 = vld [vmem:[#allocation3 + $0x84] sm:$0xf0]  ;;  %v361_v30 = vor.u32 %v487_v20, %v360_v17  ;;  %s344_s11 = sshll.u32 %s672_s4, 4  ;;  %s345_s11 = int_to_ptr.hbm [resolvable:$true] %s344_s11 }
  0x27   :  { %321 = vmatpush.bf16.msra.mxu3 %v453_v62  ;;  %v486_v24 = vld [vmem:[#allocation3 + $0x4] sm:$0xf]  ;;  %v362_v25 = vld [vmem:[#allocation3 + $0x8] sm:$0xf0]  ;;  %v63_v26 = vld [vmem:[#allocation7] sm:$0xf]  ;;  %v425_v33 = vor.u32 %v503_v22, %v424_v21 }
  0x28   :  { %v502_v27 = vld [vmem:[#allocation3 + $0x84] sm:$0xf]  ;;  %v426_v28 = vld [vmem:[#allocation3 + $0x88] sm:$0xf0]  ;;  %v72_v32 = vld [vmem:[#allocation7 + $0x8] sm:$0xf]  ;;  %v365_v34 = vor.u32 %v486_v24, %v362_v25 }
  0x29   :  { %283 = vmatpush.bf16.msra.mxu0 %v377_v4  ;;  %v67_v29 = vld [vmem:[#allocation7 + $0x4] sm:$0xf]  ;;  %v429_v37 = vor.u32 %v502_v27, %v426_v28  ;;  %vm333_vm0 = vcmask 1041408  }
  0x2a   :  { %296 = vmatpush.bf16.msra.mxu1 %v441_v6  ;;  %309 = vmatpush.bf16.msra.mxu2 %v381_v7  ;;  %v64_v31 = vstv %s656_s1 }
  0x2b   :  { %322 = vmatpush.bf16.msra.mxu3 %v445_v11  ;;  %v65_v35 = vmul.f32 %v64_v31, %v63_v26  ;;  %v68_v36 = vstv %s658_s2 }
  0x2c   :  { %v69_v38 = vmul.f32 %v68_v36, %v67_v29  ;;  %v73_v39 = vstv %s357_s30 }
  0x2d   :  { %284 = vmatpush.bf16.msra.mxu0 %v369_v16  ;;  %v74_v40 = vmul.f32 %v73_v39, %v72_v32 }
  0x2e   :  { %297 = vmatpush.bf16.msra.mxu1 %v433_v18  ;;  %310 = vmatpush.bf16.msra.mxu2 %v373_v19  ;;  %v70_v41 = vadd.f32 %v69_v38, %v65_v35 }
  0x2f   :  { %323 = vmatpush.bf16.msra.mxu3 %v437_v23 }
  0x30   :  { %v75_v42 = vadd.f32 %v74_v40, %v70_v41 }
  0x31   :  { %285 = vmatpush.bf16.msra.mxu0 %v361_v30 }
  0x32   :  { %298 = vmatpush.bf16.msra.mxu1 %v425_v33  ;;  %311 = vmatpush.bf16.msra.mxu2 %v365_v34  ;;  %77 = vst [vmem:[#allocation1] ss:$4 sm:$0xff] %v75_v42 }
  0x33   :  { %324 = vmatpush.bf16.msra.mxu3 %v429_v37 }
  0x39   :  { %v78_v43 = vld.sshfl [vmem:[#allocation1] sm:$0xff pattern:$0x73625140]  ;;  %v79_v44 = vld.sshfl [vmem:[#allocation1 + $0x8] sm:$0xff pattern:$0x73625140] }
  0x3a   :  { %v82_v45 = vpack.c.bf16 %v78_v43, %v78_v43  ;;  %v83_v46 = vpack.c.bf16 %v79_v44, %v79_v44 }
  0x3c   :  { %286 = vmatmul.bf16.vlgmr.msra.gmra.mxu0 %v82_v45  ;;  %299 = vmatmul.bf16.vlgmr.msra.gmra.mxu1 %v83_v46 }
  0x3d   :  { %312 = vmatmul.bf16.vlgmr.msra.gmra.mxu2 %v82_v45  ;;  %325 = vmatmul.bf16.vlgmr.msra.gmra.mxu3 %v83_v46 }
  0xb9   :  { %v287_v47 = vpop.f32.mrf.mxu0  ;;  %v300_v48 = vpop.f32.mrf.mxu1 }
  0xba   :  { %v288_v52 = vadd.f32 %v287_v47, %v117_v49 }
  0xbc   :  { %v301_v57 = vadd.f32 %v300_v48, %v288_v52 }
  0xc0   :  { %v313_v50 = vpop.f32.mrf.mxu2  ;;  %v326_v51 = vpop.f32.mrf.mxu3 }
  0xc1   :  { %v314_v53 = vadd.f32 %v313_v50, %v117_v49  ;;  %v289_v54 = vpop.f32.mrf.mxu0  ;;  %v302_v55 = vpop.f32.mrf.mxu1 }
  0xc3   :  { %v327_v56 = vadd.f32 %v326_v51, %v314_v53 }
  0xc5   :  { %v332_v58 = vrot.slane %v327_v56, 6 }
  0xc7   :  { %v334_v59 = vsel %vm333_vm0, %v301_v57, %v332_v58 }
  0xc8   :  { %v315_v60 = vpop.f32.mrf.mxu2  ;;  %v328_v61 = vpop.f32.mrf.mxu3  ;;  %336 = vst [vmem:[#allocation10] sm:$0xf] %v334_v59 }
  0xc9   :  { %347 = dma.vmem_to_hbm [thread:$0]  %s343_s8, 64, %s345_s11, [#allocation5]  }
  0xca   :  { %614 = dma.done.wait [#allocation5], 64  }
  0xcb   :  { %615 = vsyncadd [#allocation5], 4294967232 }
  0xcc   :  { %352 = vsyncpa [#allocation4], 1 }
  0xcd   :  { %353 = vsyncpa [#allocation8], 1 }
  0xce   :  { %354 = vsyncpa [#allocation5], 1 }
  0xcf   :  { %355 = vsyncpa [#allocation6], 1 }

</bundles_post_ra>
